<compile_context>
chip_gen: v7x
topology: tpu7x:2x2x1
jax: 0.10.0
libtpu: 0.0.40
codegen_flags: <defaults>
</compile_context>

<pallas_src>
import functools

import jax
import jax.numpy as jnp
import numpy as np
from jax.experimental import pallas as pl
from jax.experimental.pallas import tpu as pltpu


# ---------------------------------------------------------------------------
# Fused kernel: conv(3x3, SAME) + bias + ReLU + global avg pool + linear +
#               softmax + argmax.  One grid step == B images.
# ---------------------------------------------------------------------------
def fused_conv_head_kernel(x_ref, wc_ref, cb_ref, mask_ref, fw_ref, fb_ref,
                           emb_ref, logits_ref, probs_ref, preds_ref,
                           *, tap_offsets, r_out):
    x = x_ref[...]                                  # [B, Cin, r_tot]  (f32)
    bsz = x.shape[0]
    cout, k9 = wc_ref.shape                         # Cout, 9*Cin

    # im2col in VMEM, lane-dense (spatial on the lane axis):
    #   xcol[b, t*Cin + c, r] = x[b, c, r + off_t]         -> [B, 9*Cin, r_out]
    xcol = jnp.concatenate(
        [x[:, :, off:off + r_out] for off in tap_offsets], axis=1)

    # Single K=9*Cin MXU contraction per image (batched dot):
    #   [B, Cout, 9*Cin] x [B, 9*Cin, r_out] -> [B, Cout, r_out]  (f32 acc)
    wcb = jnp.broadcast_to(wc_ref[...], (bsz, cout, k9))
    conv = jax.lax.dot_general(
        wcb, xcol,
        dimension_numbers=(((2,), (1,)), ((0,), (0,))),
        preferred_element_type=jnp.float32)
    conv = jnp.maximum(conv + cb_ref[...], 0.0)     # bias + ReLU

    # Global average pool == masked mean done on VPU (mul) + XLU (lane reduce)
    # in full f32.  mask holds 1/(H*W) at valid spatial positions, 0 at the
    # padded-row garbage columns.  Equivalent to AdaptiveAvgPool2d(1)+flatten.
    emb = jnp.sum(conv * mask_ref[...], axis=-1)    # [B, Cout]
    emb_ref[...] = emb.reshape(emb_ref.shape)

    # Classifier head.
    logits = jnp.dot(emb, fw_ref[...],
                     preferred_element_type=jnp.float32) + fb_ref[...]  # [B, NC]
    logits_ref[...] = logits.reshape(logits_ref.shape)

    # Softmax with exact division (tile is tiny; exactness is free).
    m = jnp.max(logits, axis=-1, keepdims=True)
    e = jnp.exp(logits - m)
    probs = e / jnp.sum(e, axis=-1, keepdims=True)
    probs_ref[...] = probs.reshape(probs_ref.shape)

    # Argmax on logits (first max index, matching torch tie-breaking).
    nc = logits.shape[-1]
    idx = jax.lax.broadcasted_iota(jnp.int32, logits.shape, 1)
    cand = jnp.where(logits == m, idx, jnp.int32(nc))
    preds = jnp.min(cand, axis=-1, keepdims=True)
    preds_ref[...] = preds.reshape(preds_ref.shape).astype(jnp.int32)


def _pick_batch_block(n):
    """Largest B<=8 dividing n while keeping >=2 grid blocks (v7x megacore)."""
    target = max(1, min(8, n // 2))
    for b in range(target, 0, -1):
        if n % b == 0:
            return b
    return 1


# ---------------------------------------------------------------------------
# Wrapper: minimal layout plumbing + pallas_call
# ---------------------------------------------------------------------------
def classification_model_forward(x, conv_w, conv_b, fc_w, fc_b):
    """x: [N, Cin, H, W] float32 (NCHW, matching PyTorch)."""
    N, Cin, H, W = x.shape
    Cout, _, KH, KW = conv_w.shape
    NC = fc_w.shape[0]

    pad = KH // 2
    Hp, Wp = H + 2 * pad, W + 2 * pad
    r_out = H * Wp                                   # conv output rows (padded layout)
    max_off = (KH - 1) * Wp + (KW - 1)
    r_need = r_out + max_off                         # rows taps may touch
    extra_h = -(-(r_need - Hp * Wp) // Wp) if r_need > Hp * Wp else 0
    r_tot = (Hp + extra_h) * Wp

    # Single host-side pad, then a pure (no-copy) reshape: [N, Cin, r_tot].
    xp = jnp.pad(x, ((0, 0), (0, 0), (pad, pad + extra_h), (pad, pad)))
    xf = xp.reshape(N, Cin, r_tot)

    # Conv weights as [Cout, 9*Cin]; tap t=(i,j) pairs with row offset i*Wp+j.
    wc = conv_w.transpose(0, 2, 3, 1).reshape(Cout, KH * KW * Cin)
    tap_offsets = tuple(i * Wp + j for i in range(KH) for j in range(KW))

    # Pooling mask: 1/(H*W) on valid columns (w < W), 0 on pad columns.
    col = np.arange(r_out) % Wp
    mask = jnp.asarray((col < W).astype(np.float32) / float(H * W)).reshape(1, 1, r_out)

    cb = conv_b.reshape(1, Cout, 1)
    fwT = fc_w.T                                     # [Cout, NC]
    fb = fc_b.reshape(1, NC)

    B = _pick_batch_block(N)
    grid = (N // B,)

    kernel = functools.partial(fused_conv_head_kernel,
                               tap_offsets=tap_offsets, r_out=r_out)

    emb3, logits3, probs3, preds3 = pl.pallas_call(
        kernel,
        out_shape=(
            jax.ShapeDtypeStruct((N, 1, Cout), jnp.float32),
            jax.ShapeDtypeStruct((N, 1, NC), jnp.float32),
            jax.ShapeDtypeStruct((N, 1, NC), jnp.float32),
            jax.ShapeDtypeStruct((N, 1, 1), jnp.int32),
        ),
        grid_spec=pltpu.PrefetchScalarGridSpec(
            num_scalar_prefetch=0,
            grid=grid,
            in_specs=[
                pl.BlockSpec((B, Cin, r_tot), lambda n: (n, 0, 0)),   # x block
                pl.BlockSpec((Cout, KH * KW * Cin), lambda n: (0, 0)),# conv weights
                pl.BlockSpec((1, Cout, 1), lambda n: (0, 0, 0)),      # conv bias
                pl.BlockSpec((1, 1, r_out), lambda n: (0, 0, 0)),     # pool mask
                pl.BlockSpec((Cout, NC), lambda n: (0, 0)),           # fc weight^T
                pl.BlockSpec((1, NC), lambda n: (0, 0)),              # fc bias
            ],
            out_specs=(
                pl.BlockSpec((B, 1, Cout), lambda n: (n, 0, 0)),
                pl.BlockSpec((B, 1, NC), lambda n: (n, 0, 0)),
                pl.BlockSpec((B, 1, NC), lambda n: (n, 0, 0)),
                pl.BlockSpec((B, 1, 1), lambda n: (n, 0, 0)),
            ),
        ),
        compiler_params=pltpu.CompilerParams(
            dimension_semantics=("parallel",),          # megacore sharding on v7x
            vmem_limit_bytes=32 * 1024 * 1024,          # explicit, v7x-safe budget
        ),
    )(xf, wc, cb, mask, fwT, fb)

    return {
        "embeddings": emb3.reshape(N, Cout),
        "logits": logits3.reshape(N, NC),
        "probs": probs3.reshape(N, NC),
        "preds": preds3.reshape(N),
    }


# ---------------------------------------------------------------------------
# Pure-JAX reference (correctness sanity check)
# ---------------------------------------------------------------------------
def reference_forward(x, conv_w, conv_b, fc_w, fc_b):
    conv = jax.lax.conv_general_dilated(
        x, conv_w, window_strides=(1, 1), padding="SAME",
        dimension_numbers=("NCHW", "OIHW", "NCHW"))
    conv = jax.nn.relu(conv + conv_b.reshape(1, -1, 1, 1))
    emb = jnp.mean(conv, axis=(2, 3))                # adaptive avg pool + flatten(1)
    logits = emb @ fc_w.T + fc_b
    probs = jax.nn.softmax(logits, axis=1)
    preds = jnp.argmax(probs, axis=1)
    return emb, logits, probs, preds


if __name__ == "__main__":
    N, Cin, H, W = 2, 4, 16, 16
    Cout, K, NUM_CLASSES = 32, 3, 10

    key = jax.random.PRNGKey(0)
    kx, kcw, kcb, kfw, kfb = jax.random.split(key, 5)

    x = jax.random.normal(kx, (N, Cin, H, W), dtype=jnp.float32)
    conv_w = jax.random.normal(kcw, (Cout, Cin, K, K), dtype=jnp.float32) * 0.1
    conv_b = jax.random.normal(kcb, (Cout,), dtype=jnp.float32) * 0.1
    fc_w = jax.random.normal(kfw, (NUM_CLASSES, Cout), dtype=jnp.float32) * 0.1
    fc_b = jax.random.normal(kfb, (NUM_CLASSES,), dtype=jnp.float32) * 0.1

    out = classification_model_forward(x, conv_w, conv_b, fc_w, fc_b)
    jax.block_until_ready(out)

    ref_emb, ref_logits, ref_probs, ref_preds = reference_forward(
        x, conv_w, conv_b, fc_w, fc_b)
    assert jnp.allclose(out["embeddings"], ref_emb, atol=1e-4), "embeddings mismatch"
    assert jnp.allclose(out["logits"], ref_logits, atol=1e-4), "logits mismatch"
    assert jnp.allclose(out["probs"], ref_probs, atol=1e-4), "probs mismatch"
    assert jnp.array_equal(out["preds"], ref_preds.astype(jnp.int32)), "preds mismatch"

    print("KERNEL_OK")
</pallas_src>

<mosaic_0001>
module attributes {stable_mosaic.version = 11 : i64} {
  func.func @fused_conv_head_kernel(%arg0: i32, %arg1: memref<1x4x342xf32, #tpu.memory_space<vmem>>, %arg2: memref<32x36xf32, #tpu.memory_space<vmem>>, %arg3: memref<1x32x1xf32, #tpu.memory_space<vmem>>, %arg4: memref<1x1x288xf32, #tpu.memory_space<vmem>>, %arg5: memref<32x10xf32, #tpu.memory_space<vmem>>, %arg6: memref<1x10xf32, #tpu.memory_space<vmem>>, %arg7: memref<1x1x32xf32, #tpu.memory_space<vmem>>, %arg8: memref<1x1x10xf32, #tpu.memory_space<vmem>>, %arg9: memref<1x1x10xf32, #tpu.memory_space<vmem>>, %arg10: memref<1x1x1xi32, #tpu.memory_space<vmem>>) attributes {dimension_semantics = [#tpu.dimension_semantics<parallel>], iteration_bounds = array<i64: 2>, scalar_prefetch = 0 : i64, scratch_operands = 0 : i64, tpu.core_type = #tpu.core_type<tc>, window_params = [{transform_indices = @transform_0, window_bounds = array<i64: 1, 4, 342>}, {pipeline_mode = #tpu.pipeline_mode<synchronous>, transform_indices = @transform_1, window_bounds = array<i64: 32, 36>}, {pipeline_mode = #tpu.pipeline_mode<synchronous>, transform_indices = @transform_2, window_bounds = array<i64: 1, 32, 1>}, {pipeline_mode = #tpu.pipeline_mode<synchronous>, transform_indices = @transform_3, window_bounds = array<i64: 1, 1, 288>}, {pipeline_mode = #tpu.pipeline_mode<synchronous>, transform_indices = @transform_4, window_bounds = array<i64: 32, 10>}, {pipeline_mode = #tpu.pipeline_mode<synchronous>, transform_indices = @transform_5, window_bounds = array<i64: 1, 10>}, {transform_indices = @transform_6, window_bounds = array<i64: 1, 1, 32>}, {transform_indices = @transform_7, window_bounds = array<i64: 1, 1, 10>}, {transform_indices = @transform_8, window_bounds = array<i64: 1, 1, 10>}, {transform_indices = @transform_9, window_bounds = array<i64: 1, 1, 1>}]} {
    %c0 = arith.constant 0 : index
    %c0_0 = arith.constant 0 : index
    %c0_1 = arith.constant 0 : index
    %0 = vector.load %arg1[%c0, %c0_0, %c0_1] : memref<1x4x342xf32, #tpu.memory_space<vmem>>, vector<1x4x342xf32>
    %1 = vector.extract_strided_slice %0 {offsets = [0, 0, 0], sizes = [1, 4, 288], strides = [1, 1, 1]} : vector<1x4x342xf32> to vector<1x4x288xf32>
    %2 = vector.extract_strided_slice %0 {offsets = [0, 0, 1], sizes = [1, 4, 288], strides = [1, 1, 1]} : vector<1x4x342xf32> to vector<1x4x288xf32>
    %3 = vector.extract_strided_slice %0 {offsets = [0, 0, 2], sizes = [1, 4, 288], strides = [1, 1, 1]} : vector<1x4x342xf32> to vector<1x4x288xf32>
    %4 = vector.extract_strided_slice %0 {offsets = [0, 0, 18], sizes = [1, 4, 288], strides = [1, 1, 1]} : vector<1x4x342xf32> to vector<1x4x288xf32>
    %5 = vector.extract_strided_slice %0 {offsets = [0, 0, 19], sizes = [1, 4, 288], strides = [1, 1, 1]} : vector<1x4x342xf32> to vector<1x4x288xf32>
    %6 = vector.extract_strided_slice %0 {offsets = [0, 0, 20], sizes = [1, 4, 288], strides = [1, 1, 1]} : vector<1x4x342xf32> to vector<1x4x288xf32>
    %7 = vector.extract_strided_slice %0 {offsets = [0, 0, 36], sizes = [1, 4, 288], strides = [1, 1, 1]} : vector<1x4x342xf32> to vector<1x4x288xf32>
    %8 = vector.extract_strided_slice %0 {offsets = [0, 0, 37], sizes = [1, 4, 288], strides = [1, 1, 1]} : vector<1x4x342xf32> to vector<1x4x288xf32>
    %9 = vector.extract_strided_slice %0 {offsets = [0, 0, 38], sizes = [1, 4, 288], strides = [1, 1, 1]} : vector<1x4x342xf32> to vector<1x4x288xf32>
    %10 = tpu.concatenate %1, %2, %3, %4, %5, %6, %7, %8, %9 in 1 : vector<1x4x288xf32>, vector<1x4x288xf32>, vector<1x4x288xf32>, vector<1x4x288xf32>, vector<1x4x288xf32>, vector<1x4x288xf32>, vector<1x4x288xf32>, vector<1x4x288xf32>, vector<1x4x288xf32> -> vector<1x36x288xf32>
    %c0_2 = arith.constant 0 : index
    %c0_3 = arith.constant 0 : index
    %11 = vector.load %arg2[%c0_2, %c0_3] : memref<32x36xf32, #tpu.memory_space<vmem>>, vector<32x36xf32>
    %12 = vector.shape_cast %11 : vector<32x36xf32> to vector<1x32x36xf32>
    %cst = arith.constant dense<0.000000e+00> : vector<1x32x288xf32>
    %13 = tpu.matmul %12, %10, %cst {dimension_numbers = #tpu.dot_dimension_numbers<[2], [1], [1], [2], [0, 0, 0, 1, 1, 2], [0], [0]>} : vector<1x32x36xf32>, vector<1x36x288xf32>, vector<1x32x288xf32> -> vector<1x32x288xf32>
    %c0_4 = arith.constant 0 : index
    %c0_5 = arith.constant 0 : index
    %c0_6 = arith.constant 0 : index
    %14 = vector.load %arg3[%c0_4, %c0_5, %c0_6] : memref<1x32x1xf32, #tpu.memory_space<vmem>>, vector<1x32x1xf32>
    %15 = vector.broadcast %14 : vector<1x32x1xf32> to vector<1x32x288xf32>
    %16 = arith.addf %13, %15 : vector<1x32x288xf32>
    %cst_7 = arith.constant 0.000000e+00 : f32
    %17 = vector.broadcast %cst_7 : f32 to vector<1x32x288xf32>
    %18 = arith.maximumf %16, %17 : vector<1x32x288xf32>
    %c0_8 = arith.constant 0 : index
    %c0_9 = arith.constant 0 : index
    %c0_10 = arith.constant 0 : index
    %19 = vector.load %arg4[%c0_8, %c0_9, %c0_10] : memref<1x1x288xf32, #tpu.memory_space<vmem>>, vector<1x1x288xf32>
    %20 = vector.broadcast %19 : vector<1x1x288xf32> to vector<1x32x288xf32>
    %21 = arith.mulf %18, %20 : vector<1x32x288xf32>
    %cst_11 = arith.constant dense<0.000000e+00> : vector<1x32xf32>
    %22 = vector.multi_reduction <add>, %21, %cst_11 [2] : vector<1x32x288xf32> to vector<1x32xf32>
    %23 = vector.shape_cast %22 : vector<1x32xf32> to vector<1x1x32xf32>
    %c0_12 = arith.constant 0 : index
    %c0_13 = arith.constant 0 : index
    %c0_14 = arith.constant 0 : index
    %24 = vector.load %arg7[%c0_12, %c0_13, %c0_14] : memref<1x1x32xf32, #tpu.memory_space<vmem>>, vector<1x1x32xf32>
    tpu.vector_store %arg7[%c0_12, %c0_13, %c0_14], %23 {strides = array<i32>} : memref<1x1x32xf32, #tpu.memory_space<vmem>>, vector<1x1x32xf32>,
    %c0_15 = arith.constant 0 : index
    %c0_16 = arith.constant 0 : index
    %25 = vector.load %arg5[%c0_15, %c0_16] : memref<32x10xf32, #tpu.memory_space<vmem>>, vector<32x10xf32>
    %cst_17 = arith.constant dense<0.000000e+00> : vector<1x10xf32>
    %26 = tpu.matmul %22, %25, %cst_17 {dimension_numbers = #tpu.dot_dimension_numbers<[1], [0], [0], [1], [0, 0, 1, 1], [], []>} : vector<1x32xf32>, vector<32x10xf32>, vector<1x10xf32> -> vector<1x10xf32>
    %c0_18 = arith.constant 0 : index
    %c0_19 = arith.constant 0 : index
    %27 = vector.load %arg6[%c0_18, %c0_19] : memref<1x10xf32, #tpu.memory_space<vmem>>, vector<1x10xf32>
    %28 = arith.addf %26, %27 : vector<1x10xf32>
    %29 = vector.shape_cast %28 : vector<1x10xf32> to vector<1x1x10xf32>
    %c0_20 = arith.constant 0 : index
    %c0_21 = arith.constant 0 : index
    %c0_22 = arith.constant 0 : index
    %30 = vector.load %arg8[%c0_20, %c0_21, %c0_22] : memref<1x1x10xf32, #tpu.memory_space<vmem>>, vector<1x1x10xf32>
    tpu.vector_store %arg8[%c0_20, %c0_21, %c0_22], %29 {strides = array<i32>} : memref<1x1x10xf32, #tpu.memory_space<vmem>>, vector<1x1x10xf32>,
    %cst_23 = arith.constant dense<0xFF800000> : vector<1xf32>
    %31 = vector.multi_reduction <maximumf>, %28, %cst_23 [1] : vector<1x10xf32> to vector<1xf32>
    %32 = vector.shape_cast %31 : vector<1xf32> to vector<1x1xf32>
    %33 = vector.broadcast %32 : vector<1x1xf32> to vector<1x10xf32>
    %34 = arith.subf %28, %33 : vector<1x10xf32>
    %35 = math.exp %34 : vector<1x10xf32>
    %cst_24 = arith.constant dense<0.000000e+00> : vector<1xf32>
    %36 = vector.multi_reduction <add>, %35, %cst_24 [1] : vector<1x10xf32> to vector<1xf32>
    %37 = vector.shape_cast %36 : vector<1xf32> to vector<1x1xf32>
    %38 = vector.broadcast %37 : vector<1x1xf32> to vector<1x10xf32>
    %39 = arith.divf %35, %38 : vector<1x10xf32>
    %40 = vector.shape_cast %39 : vector<1x10xf32> to vector<1x1x10xf32>
    %c0_25 = arith.constant 0 : index
    %c0_26 = arith.constant 0 : index
    %c0_27 = arith.constant 0 : index
    %41 = vector.load %arg9[%c0_25, %c0_26, %c0_27] : memref<1x1x10xf32, #tpu.memory_space<vmem>>, vector<1x1x10xf32>
    tpu.vector_store %arg9[%c0_25, %c0_26, %c0_27], %40 {strides = array<i32>} : memref<1x1x10xf32, #tpu.memory_space<vmem>>, vector<1x1x10xf32>,
    %42 = tpu.iota {dimensions = array<i32: 1>} : vector<1x10xi32>
    %43 = vector.broadcast %32 : vector<1x1xf32> to vector<1x10xf32>
    %44 = arith.cmpf oeq, %28, %43 : vector<1x10xf32>
    %c10_i32 = arith.constant 10 : i32
    %45 = vector.broadcast %c10_i32 : i32 to vector<1x10xi32>
    %46 = arith.select %44, %42, %45 : vector<1x10xi1>, vector<1x10xi32>
    %cst_28 = arith.constant dense<2147483647> : vector<1xi32>
    %47 = vector.multi_reduction <minsi>, %46, %cst_28 [1] : vector<1x10xi32> to vector<1xi32>
    %48 = vector.shape_cast %47 : vector<1xi32> to vector<1x1xi32>
    %49 = vector.shape_cast %48 : vector<1x1xi32> to vector<1x1x1xi32>
    %c0_29 = arith.constant 0 : index
    %c0_30 = arith.constant 0 : index
    %c0_31 = arith.constant 0 : index
    %50 = vector.load %arg10[%c0_29, %c0_30, %c0_31] : memref<1x1x1xi32, #tpu.memory_space<vmem>>, vector<1x1x1xi32>
    tpu.vector_store %arg10[%c0_29, %c0_30, %c0_31], %49 {strides = array<i32>} : memref<1x1x1xi32, #tpu.memory_space<vmem>>, vector<1x1x1xi32>,
    return
  }
  func.func @transform_0(%arg0: i32) -> (i32, i32, i32) {
    %c0_i32 = arith.constant 0 : i32
    %c0_i32_0 = arith.constant 0 : i32
    %c0_i32_1 = arith.constant 0 : i32
    return %arg0, %c0_i32, %c0_i32_0 : i32, i32, i32
  }
  func.func @transform_1(%arg0: i32) -> (i32, i32) {
    %c0_i32 = arith.constant 0 : i32
    %c0_i32_0 = arith.constant 0 : i32
    %c0_i32_1 = arith.constant 0 : i32
    return %c0_i32, %c0_i32_0 : i32, i32
  }
  func.func @transform_2(%arg0: i32) -> (i32, i32, i32) {
    %c0_i32 = arith.constant 0 : i32
    %c0_i32_0 = arith.constant 0 : i32
    %c0_i32_1 = arith.constant 0 : i32
    %c0_i32_2 = arith.constant 0 : i32
    return %c0_i32, %c0_i32_0, %c0_i32_1 : i32, i32, i32
  }
  func.func @transform_3(%arg0: i32) -> (i32, i32, i32) {
    %c0_i32 = arith.constant 0 : i32
    %c0_i32_0 = arith.constant 0 : i32
    %c0_i32_1 = arith.constant 0 : i32
    %c0_i32_2 = arith.constant 0 : i32
    return %c0_i32, %c0_i32_0, %c0_i32_1 : i32, i32, i32
  }
  func.func @transform_4(%arg0: i32) -> (i32, i32) {
    %c0_i32 = arith.constant 0 : i32
    %c0_i32_0 = arith.constant 0 : i32
    %c0_i32_1 = arith.constant 0 : i32
    return %c0_i32, %c0_i32_0 : i32, i32
  }
  func.func @transform_5(%arg0: i32) -> (i32, i32) {
    %c0_i32 = arith.constant 0 : i32
    %c0_i32_0 = arith.constant 0 : i32
    %c0_i32_1 = arith.constant 0 : i32
    return %c0_i32, %c0_i32_0 : i32, i32
  }
  func.func @transform_6(%arg0: i32) -> (i32, i32, i32) {
    %c0_i32 = arith.constant 0 : i32
    %c0_i32_0 = arith.constant 0 : i32
    %c0_i32_1 = arith.constant 0 : i32
    return %arg0, %c0_i32, %c0_i32_0 : i32, i32, i32
  }
  func.func @transform_7(%arg0: i32) -> (i32, i32, i32) {
    %c0_i32 = arith.constant 0 : i32
    %c0_i32_0 = arith.constant 0 : i32
    %c0_i32_1 = arith.constant 0 : i32
    return %arg0, %c0_i32, %c0_i32_0 : i32, i32, i32
  }
  func.func @transform_8(%arg0: i32) -> (i32, i32, i32) {
    %c0_i32 = arith.constant 0 : i32
    %c0_i32_0 = arith.constant 0 : i32
    %c0_i32_1 = arith.constant 0 : i32
    return %arg0, %c0_i32, %c0_i32_0 : i32, i32, i32
  }
  func.func @transform_9(%arg0: i32) -> (i32, i32, i32) {
    %c0_i32 = arith.constant 0 : i32
    %c0_i32_0 = arith.constant 0 : i32
    %c0_i32_1 = arith.constant 0 : i32
    return %arg0, %c0_i32, %c0_i32_0 : i32, i32, i32
  }
}

</mosaic_0001>

<bundles_post_ra>
// kernel: tpu_custom_call.1
= control target key start
LH: loop header
LB: loop body
LE: loop exit
PB: predicated region body
PF: predicated region fallthrough
CT: control target
= control target key end

     0   :  { %s1766_s0 = inlined_call_operand.vmem [shape: f32[2,4,342], index: 0, kind: input, shape index: {}]   ;;  %s1767_s1 = inlined_call_operand.vmem [shape: f32[32,36], index: 1, kind: input, shape index: {}]   ;;  %s1768_s2 = inlined_call_operand.vmem [shape: f32[1,32,1], index: 2, kind: input, shape index: {}]   ;;  %s1769_s3 = inlined_call_operand.vmem [shape: f32[1,1,288], index: 3, kind: input, shape index: {}]   ;;  %s1770_s4 = inlined_call_operand.vmem [shape: f32[32,10], index: 4, kind: input, shape index: {}]   ;;  %s1771_s5 = inlined_call_operand.vmem [shape: f32[1,10], index: 5, kind: input, shape index: {}]   ;;  %s1772_s6 = inlined_call_operand.hbm [shape: f32[2,1,32], index: 6, kind: output, shape index: {0}]   ;;  %s1773_s7 = inlined_call_operand.hbm [shape: f32[2,1,10], index: 7, kind: output, shape index: {1}]   ;;  %s1774_s8 = inlined_call_operand.hbm [shape: f32[2,1,10], index: 8, kind: output, shape index: {2}]   ;;  %s1775_s9 = inlined_call_operand.vmem [shape: s32[2,1,1], index: 9, kind: output, shape index: {3}]  }
   0x1   :  { %1778 = sst [smem:[#allocation9_spill]] %s1766_s0 }
   0x2   :  { %1779 = sst [smem:[#allocation10_spill]] %s1767_s1 }
   0x3   :  { %1780 = sst [smem:[#allocation11_spill]] %s1768_s2 }
   0x4   :  { %15 = vsyncpa [#allocation3], 0 }
   0x5   :  { %17 = vsyncpa [#allocation3 + $0x1], 0 }
   0x6   :  { %18 = vsyncpa [#allocation5], 0 }
   0x7   :  { %20 = vsyncpa [#allocation5 + $0x1], 0  ;;  %s1455_s30 = smov 0   ;;  %s1457_s10 = smov 0  }
   0x8   :  { %s1459_s11 = smov 0   ;;  %s1461_s12 = smov 0  }
   0x9 LB: > { %s1476_s13 = sadd.s32 4294967295, %s1388_s12   ;;  %s1776_s14 = sadd.s32 4294967294, %s1388_s12   ;;  %s1388_s12 = sphi %s1461_s12, %s1791_s12   ;;  %s1384_s11 = sphi %s1459_s11, %s1790_s11   ;;  %s1380_s10 = sphi %s1457_s10, %s1789_s10   ;;  %s1376_s30 = sphi %s1455_s30, %s1788_s30  }
   0xa   : > { %s1480_s15 = sadd.s32 1, %s1388_s12   ;;  %s164_s16 = sadd.s32 1, %s1384_s11 }
   0xb   : > { %s161_s17 = ssub.s32 %s1388_s12, %s1480_s15  ;;  %p174_p0 = scmp.ne.s32.totalorder %s1384_s11, %s1380_s10 }
   0xc   : > { %p162_p1 = scmp.eq.s32.totalorder %s161_s17, 0  ;;  %p175_p2 = scmp.eq.s32.totalorder %s1476_s13, 1 }
   0xd   : > { %p180_p3 = scmp.ne.s32.totalorder %s1380_s10, %s1376_s30  ;;  %p181_p4 = scmp.eq.s32.totalorder %s1776_s14, 1 }
   0xe   : > { %s1493_s18 = scalar_select %p162_p1, %s1384_s11, %s164_s16  }
   0xf   : > { %p1495_p5 = por %p175_p2, %p174_p0  ;;  %p1499_p6 = por %p181_p4, %p180_p3 }
  0x10   : > { %p1078_p7 = scmp.ge.s32.totalorder %s1388_s12, 1  ;;  %p300_p8 = scmp.lt.s32.totalorder %s1388_s12, 3 }
  0x12   : > { %p301_p9 = pnand %p1078_p7, %p300_p8 }
  0x13   : > { %p346_p10 = scmp.lt.s32.totalorder (!%p301_p9), %s1476_s13, 1  ;;  %s1783_s0 = sld [smem:[#allocation9_spill]] (!%p301_p9)  ;;  %vm496_vm0 = vcmask (!%p301_p9), 293888   ;;  %v1397_v8 = vmov (!%p301_p9), 0.0   ;;  %v1399_v11 = vmov (!%p301_p9), 0   ;;  %vm368_vm1 = vcmask (!%p301_p9), 1039360  }
  0x14   : > { %304 = sbr.rel (%p301_p9) target bundleno = 1220 (0x4c4), region = 44  ;;  %s1390_s26 = smov (!%p301_p9), 126   ;;  %579 = vmatprep.mubr.f32.mxu0 (!%p301_p9), %v1397_v8  ;;  %1257 = vset.pattern.permute.xlu1 (!%p301_p9), %v1399_v11  ;;  %vm455_vm2 = vcmask (!%p301_p9), 1043456   ;;  %vm392_vm3 = vcmask (!%p301_p9), 900096   ;;  %vm380_vm4 = vcmask (!%p301_p9), 1031168   ;;  %vm404_vm5 = vcmask (!%p301_p9), 891904  }
  0x15   : > { %s1391_s27 = smov (!%p301_p9), 110   ;;  %s1392_s28 = smov (!%p301_p9), 127   ;;  %1258 = vset.pattern.permute.xlu0 (!%p301_p9), %v1399_v11  ;;  %vm416_vm6 = vcmask (!%p301_p9), 883712   ;;  %vm428_vm7 = vcmask (!%p301_p9), 752640   ;;  %vm440_vm8 = vcmask (!%p301_p9), 744448   ;;  %vm452_vm9 = vcmask (!%p301_p9), 736256  }
  0x16   : > { %s1393_s29 = smov (!%p301_p9), 109   ;;  %s1394_s16 = smov (!%p301_p9), 108   ;;  %vm731_vm10 = vcmask (!%p301_p9), 261120   ;;  %vm1401_vm11 = vmmov (!%p301_p9), 0   ;;  %vm766_vm12 = vcmask (!%p301_p9), 130112   ;;  %vm773_vm13 = vcmask (!%p301_p9), 195712  }
  0x17   : > { %s1395_s17 = smov (!%p301_p9), 92   ;;  %s1784_s1 = sld [smem:[#allocation10_spill]] (!%p301_p9)  ;;  %vm780_vm14 = vcmask (!%p301_p9), 261312   ;;  %vm783_vm15 = vcmask (!%p301_p9), 253952  }
  0x18   : > { %s1785_s2 = sld [smem:[#allocation11_spill]] (!%p301_p9) }
  0x1b   : > { %s1507_s21 = scalar_select %p346_p10, %s1476_s13, 1 }
  0x1d   : > { %s1160_s22 = smul.u32 12, %s1507_s21  ;;  %v1530_v7 = vld [vmem:[%s1784_s1] sm:$0xff] }
  0x1e   : > { %1121 = vmatprep.mubr.msk.f32.mxu1 %vm496_vm0, %v1530_v7  ;;  %v472_v9 = vld [vmem:[%s1785_s2] sm:$0xff]  ;;  %v473_v10 = vld [vmem:[%s1785_s2 + $0x8] sm:$0xff]  ;;  %v474_v12 = vld [vmem:[%s1785_s2 + $0x10] sm:$0xff] }
  0x1f   : > { %s350_s25 = scalar_lea.vmem %s1783_s0, %s1160_s22  ;;  %s1396_s22 = smov 91   ;;  %v475_v13 = vld [vmem:[%s1785_s2 + $0x18] sm:$0xff] }
  0x20   : > { %v1513_v0 = vld [vmem:[%s350_s25] sm:$0xff]  ;;  %v1515_v1 = vld [vmem:[%s350_s25 + $0x8] sm:$0xf]  ;;  %s1398_s25 = smov 90  }
  0x21   : > { %374 = vrot.lane.b32.xlu0 %v1513_v0, %s1390_s26  ;;  %v361_v2 = vcombine.low %v1515_v1, %v1515_v1  ;;  %v358_v3 = vcombine.high %v1513_v0, %v1513_v0  ;;  %v360_v5 = vcombine.low %v1513_v0, %v1513_v0 }
  0x23   : > { %v1232_v4 = vpack.i.bf16 %v361_v2, %v1513_v0  ;;  %v1227_v6 = vpack.i.bf16 %v1515_v1, %v358_v3 }
  0x25   : > { %1233 = vrot.lane.b32.xlu1 %v1232_v4, %s1391_s27  ;;  %1223 = vrot.lane.b32.xlu0 %v1232_v4, %s1392_s28 }
  0x29   : > { %362 = vrot.lane.b32.xlu1 %v360_v5, %s1392_s28  ;;  %1228 = vrot.lane.b32.xlu0 %v1227_v6, %s1390_s26  ;;  %s1647_s26 = sshll.u32 %s1476_s13, 4 }
  0x2d   : > { %386 = vrot.lane.b32.xlu1 %v360_v5, %s1391_s27  ;;  %1238 = vrot.lane.b32.xlu0 %v1227_v6, %s1393_s29  ;;  %s1402_s27 = smov [#allocation4]  }
  0x31   : > { %1243 = vrot.lane.b32.xlu1 %v1232_v4, %s1394_s16  ;;  %1248 = vrot.lane.b32.xlu0 %v1227_v6, %s1395_s17 }
  0x35   : > { %1253 = vrot.lane.b32.xlu1 %v1232_v4, %s1396_s22  ;;  %398 = vrot.lane.b32.xlu0 %v1513_v0, %s1393_s29  ;;  %s1653_s29 = scalar_lea.hbm %s1773_s7, %s1647_s26 }
  0x39   : > { %410 = vrot.lane.b32.xlu1 %v360_v5, %s1394_s16  ;;  %422 = vrot.lane.b32.xlu0 %v1513_v0, %s1395_s17  ;;  %s1628_s16 = sand.u32 1, %s1380_s10  }
  0x3a   : > { %s1777_s17 = scalar_lea.vmem [#allocation2], %s1628_s16  ;;  %s334_s24 = scalar_lea.vmem [#allocation4], %s1628_s16 }
  0x3d   : > { %434 = vrot.lane.b32.xlu1 %v360_v5, %s1396_s22  ;;  %448 = vrot.lane.b32.xlu0 %v358_v3, %s1398_s25  ;;  %s932_s22 = sshll.u32 %s334_s24, 4  ;;  %s1655_s22 = int_to_ptr.vmem [resolvable:$true] %s932_s22 }
  0x3e   : > { %s1266_s0 = scalar_lea.vmem %s1655_s22, 16 }
  0x3f   : > { %p1267_p11 = scmp.ne.s32.totalorder %s1655_s22, %s1266_s0 }
  0x41   : > { %450 = vrot.lane.b32.xlu1 %v1515_v1, %s1398_s25  ;;  %446 = vrot.lane.b32.xlu0 %v1513_v0, %s1398_s25  ;;  %s899_s25 = sand.u32 1, %s1476_s13   ;;  %p1268_p12 = pnand %p1267_p11, %p1495_p5 }
  0x42   : > { %s1663_s13 = scalar_lea.sflag [#allocation5], %s899_s25 }
  0x43   : > { %p1269_p13 = pneg %p1268_p12 }
  0x45   : > { %478 = vperm.xlu1 %1257, %v472_v9   ;;  %483 = vperm.xlu0 %1258, %v473_v10  }
  0x49   : > { %488 = vperm.xlu1 %1257, %v474_v12  }
  0x4d   : > { %493 = vperm.xlu1 %1257, %v475_v13  }
  0x93   : > { %v375_v14 = vpop.permute.xlu0 %374 }
  0x97   : > { %v1234_v15 = vpop.permute.xlu1 %1233  ;;  %v1224_v16 = vpop.permute.xlu0 %1223 }
  0x98   : > { %v1226_v17 = vunpack.i.h.bf16 %v1224_v16  ;;  %v1225_v18 = vunpack.i.l.bf16 %v1224_v16  ;;  %v1236_v19 = vunpack.i.h.bf16 %v1234_v15  ;;  %v1235_v20 = vunpack.i.l.bf16 %v1234_v15 }
  0x9a   : > { %v370_v21 = vsel %vm368_vm1, %v1225_v18, %v1226_v17  ;;  %v458_v26 = vsel %vm455_vm2, %v1515_v1, %v1226_v17  ;;  %v394_v31 = vsel %vm392_vm3, %v1235_v20, %v1236_v19  ;;  %v470_v17 = vld [vmem:[%s1784_s1 + $0x10] sm:$0xff] }
  0x9b   : > { %v363_v22 = vpop.permute.xlu1 %362  ;;  %v1229_v23 = vpop.permute.xlu0 %1228  ;;  %v457_v27 = vsel %vm455_vm2, %v358_v3, %v370_v21 }
  0x9c   : > { %v1231_v24 = vunpack.i.h.bf16 %v1229_v23  ;;  %v1230_v25 = vunpack.i.l.bf16 %v1229_v23  ;;  %v369_v28 = vsel %vm368_vm1, %v363_v22, %v1225_v18 }
  0x9d   : > { %v456_v39 = vsel %vm455_vm2, %v1513_v0, %v369_v28 }
  0x9e   : > { %v461_v29 = vsel %vm455_vm2, %v1231_v24, %v1236_v19  ;;  %v382_v30 = vsel %vm380_vm4, %v1230_v25, %v1231_v24  ;;  %v381_v38 = vsel %vm380_vm4, %v375_v14, %v1230_v25  ;;  %v469_v14 = vld [vmem:[%s1784_s1 + $0x8] sm:$0xff]  ;;  %v471_v19 = vld [vmem:[%s1784_s1 + $0x18] sm:$0xff] }
  0x9f   : > { %v387_v32 = vpop.permute.xlu1 %386  ;;  %v1239_v33 = vpop.permute.xlu0 %1238  ;;  %v1146_v34 = vpack.c.bf16 %v461_v29, %v458_v26  ;;  %v460_v35 = vsel %vm455_vm2, %v382_v30, %v394_v31  ;;  %v701_v26 = vld [vmem:[%s1769_s3] sm:$0x7] }
  0xa0   : > { %v393_v36 = vsel %vm392_vm3, %v387_v32, %v1235_v20  ;;  %v1138_v37 = vpack.c.bf16 %v460_v35, %v457_v27  ;;  %v1241_v42 = vunpack.i.h.bf16 %v1239_v33  ;;  %v1240_v43 = vunpack.i.l.bf16 %v1239_v33 }
  0xa1   : > { %1147 = vmatprep.subr.bf16.mxu1 %v1146_v34  ;;  %v459_v40 = vsel %vm455_vm2, %v381_v38, %v393_v36  ;;  %v703_v20 = vlaneseq }
  0xa2   : > { %1139 = vmatprep.subr.bf16.mxu0 %v1138_v37  ;;  %1149 = vmatpush3.bf16.msra.mxu1 %v1146_v34  ;;  %v1140_v41 = vpack.c.bf16 %v459_v40, %v456_v39  ;;  %v406_v52 = vsel %vm404_vm5, %v1240_v43, %v1241_v42 }
  0xa3   : > { %v1244_v44 = vpop.permute.xlu1 %1243  ;;  %v1249_v45 = vpop.permute.xlu0 %1248  ;;  %v1597_v21 = vshrl.u32 %v703_v20, 7 }
  0xa4   : > { %v1246_v46 = vunpack.i.h.bf16 %v1244_v44  ;;  %v1245_v47 = vunpack.i.l.bf16 %v1244_v44  ;;  %v1251_v48 = vunpack.i.h.bf16 %v1249_v45  ;;  %v1250_v49 = vunpack.i.l.bf16 %v1249_v45  ;;  %1141 = vmatpush1.bf16.msra.mxu0 %v1140_v41 }
  0xa5   : > { %v705_v24 = vsub.s32 0, %v1597_v21  ;;  %v709_v27 = vsub.s32 1, %v1597_v21 }
  0xa6   : > { %v418_v55 = vsel %vm416_vm6, %v1245_v47, %v1246_v46  ;;  %v430_v56 = vsel %vm428_vm7, %v1250_v49, %v1251_v48  ;;  %v464_v58 = vsel %vm455_vm2, %v1241_v42, %v1246_v46 }
  0xa7   : > { %v1254_v50 = vpop.permute.xlu1 %1253  ;;  %v399_v51 = vpop.permute.xlu0 %398  ;;  %v463_v63 = vsel %vm455_vm2, %v406_v52, %v418_v55  ;;  %v706_v35 = vrot.slane %v701_v26, %v705_v24  ;;  %v710_v40 = vrot.slane %v701_v26, %v709_v27 }
  0xa8   : > { %v1256_v53 = vunpack.i.h.bf16 %v1254_v50  ;;  %v1255_v54 = vunpack.i.l.bf16 %v1254_v50  ;;  %v405_v5 = vsel %vm404_vm5, %v399_v51, %v1240_v43 }
  0xaa   : > { %v442_v57 = vsel %vm440_vm8, %v1255_v54, %v1256_v53  ;;  %v467_v59 = vsel %vm455_vm2, %v1251_v48, %v1256_v53 }
  0xab   : > { %v411_v60 = vpop.permute.xlu1 %410  ;;  %v423_v61 = vpop.permute.xlu0 %422  ;;  %v1150_v62 = vpack.c.bf16 %v467_v59, %v464_v58  ;;  %v466_v0 = vsel %vm455_vm2, %v430_v56, %v442_v57 }
  0xac   : > { %v1142_v1 = vpack.c.bf16 %v466_v0, %v463_v63  ;;  %v417_v2 = vsel %vm416_vm6, %v411_v60, %v1245_v47  ;;  %v429_v6 = vsel %vm428_vm7, %v423_v61, %v1250_v49 }
  0xad   : > { %1151 = vmatprep.subr.bf16.mxu1 %v1150_v62  ;;  %v462_v10 = vsel %vm455_vm2, %v405_v5, %v417_v2 }
  0xae   : > { %1143 = vmatprep.subr.bf16.mxu0 %v1142_v1  ;;  %1153 = vmatpush3.bf16.msra.mxu1 %v1150_v62 }
  0xaf   : > { %v435_v3 = vpop.permute.xlu1 %434  ;;  %v449_v4 = vpop.permute.xlu0 %448 }
  0xb0   : > { %v441_v9 = vsel %vm440_vm8, %v435_v3, %v1255_v54 }
  0xb1   : > { %v465_v11 = vsel %vm455_vm2, %v429_v6, %v441_v9 }
  0xb2   : > { %v1144_v12 = vpack.c.bf16 %v465_v11, %v462_v10 }
  0xb3   : > { %v451_v13 = vpop.permute.xlu1 %450  ;;  %v447_v15 = vpop.permute.xlu0 %446 }
  0xb4   : > { %1145 = vmatpush1.bf16.msra.mxu0 %v1144_v12  ;;  %v454_v16 = vsel %vm452_vm9, %v449_v4, %v451_v13  ;;  %1119 = vmatprep.subr.msk.mxu1 %vm455_vm2, %v451_v13  ;;  %v453_v18 = vsel %vm452_vm9, %v447_v15, %v449_v4 }
  0xb5   : > { %1080 = vmatprep.subr.msk.mxu0 %vm455_vm2, %v454_v16  ;;  %1120 = vmatpush3.msk.msra.mxu1 %vm455_vm2, %v451_v13 }
  0xb6   : > { %1122 = vmatmul.mubr.msk.f32.vlgmr.msra.gmra.mrb[0].mxu1 %vm496_vm0, %v469_v14 }
  0xb7   : > { %1124 = vmatprep.mubr.msk.f32.mxu1 %vm496_vm0, %v470_v17 }
  0xb8   : > { %1081 = vmatpush1.msk.msra.mxu0 %vm455_vm2, %v453_v18 }
  0xb9   : > { %1082 = vmatmul.mubr.msk.f32.vlgmr.msra.gmra.mrb[0].mxu0 %vm496_vm0, %v1530_v7  ;;  %v713_v7 = vsub.s32 2, %v1597_v21 }
  0xba   : > { %585 = vmatprep.mubr.f32.mxu0 %v1397_v8  ;;  %1125 = vmatmul.mubr.msk.f32.gmra.mrb[2].mxu1 %vm496_vm0, %v471_v19 }
  0xbb   : > { %v714_v30 = vrot.slane %v701_v26, %v713_v7  ;;  %1135 = vmatprep.mubr.msk.f32.mxu1 %vm1401_vm11, %v1397_v8 }
  0xbd   : > { %1083 = vmatmul.mubr.msk.f32.gmra.mrb[2].mxu0 %vm496_vm0, %v469_v14 }
  0xbe   : > { %591 = vmatprep.mubr.f32.mxu0 %v1397_v8 }
  0xc1   : > { %1084 = vmatmul.mubr.msk.f32.gmra.mrb[4].mxu0 %vm496_vm0, %v470_v17 }
  0xc2   : > { %597 = vmatprep.mubr.f32.mxu0 %v1397_v8 }
  0xc4   : > { %v479_v22 = vpop.permute.xlu1 %478  ;;  %v484_v23 = vpop.permute.xlu0 %483 }
  0xc5   : > { %1085 = vmatmul.mubr.msk.f32.gmra.mrb[6].mxu0 %vm496_vm0, %v471_v19  ;;  %vm862_vm0 = vcmask 73728  }
  0xc8   : > { %v489_v33 = vpop.permute.xlu1 %488 }
  0xcc   : > { %v494_v52 = vpop.permute.xlu1 %493 }
 0x189   : > { %v1123_v25 = vpop.f32.mrb[0].mxu1 }
 0x18a   : > { %v670_v28 = vpop.f32.mrb[1].mxu1  ;;  %v676_v31 = vadd.f32 %v1123_v25, %v484_v23 }
 0x18b   : > { %v671_v29 = vadd.f32 %v670_v28, %v479_v22 }
 0x18c   : > { %v581_v32 = vpop.f32.mrb[0].mxu0  ;;  %v694_v44 = vmax.f32 %v676_v31, 0.0 }
 0x18d   : > { %v582_v34 = vadd.f32 %v581_v32, %v479_v22  ;;  %v583_v36 = vpop.f32.mrb[1].mxu0  ;;  %v691_v37 = vmax.f32 %v671_v29, 0.0  ;;  %v1126_v38 = vpop.f32.mrb[2].mxu1  ;;  %v785_v32 = vld [vmem:[%s1770_s4] sm:$0xff] }
 0x18e   : > { %v584_v39 = vadd.f32 %v583_v36, %v479_v22  ;;  %v680_v41 = vpop.f32.mrb[3].mxu1  ;;  %v723_v56 = vmul.f32 %v714_v30, %v694_v44  ;;  %v686_v61 = vadd.f32 %v1126_v38, %v494_v52  ;;  %v788_v36 = vld [vmem:[%s1770_s4 + $0x18] sm:$0xff]  ;;  %v756_v38 = vand.u32 127, %v703_v20 }
 0x18f   : > { %v689_v42 = vmax.f32 %v582_v34, 0.0  ;;  %v720_v43 = vmul.f32 %v714_v30, %v691_v37  ;;  %v681_v50 = vadd.f32 %v680_v41, %v489_v33 }
 0x190   : > { %v690_v45 = vmax.f32 %v584_v39, 0.0  ;;  %v587_v46 = vpop.f32.mrb[2].mxu0  ;;  %v737_v5 = vsel %vm731_vm10, %v723_v56, 0.0  ;;  %v700_v11 = vmax.f32 %v686_v61, 0.0  ;;  %v761_v39 = vadd.s32 4294967288, %v756_v38 }
 0x191   : > { %v718_v47 = vmul.f32 %v706_v35, %v689_v42  ;;  %v588_v48 = vadd.f32 %v587_v46, %v484_v23  ;;  %v589_v49 = vpop.f32.mrb[3].mxu0  ;;  %v732_v55 = vsel %vm731_vm10, %v720_v43, 0.0  ;;  %v697_v62 = vmax.f32 %v681_v50, 0.0 }
 0x192   : > { %v719_v51 = vmul.f32 %v710_v40, %v690_v45  ;;  %v590_v53 = vadd.f32 %v589_v49, %v484_v23  ;;  %v729_v25 = vmul.f32 %v714_v30, %v700_v11  ;;  %v764_v42 = vsub.s32 %v761_v39, %v1597_v21 }
 0x193   : > { %v692_v54 = vmax.f32 %v588_v48, 0.0  ;;  %v726_v12 = vmul.f32 %v714_v30, %v697_v62  ;;  %v787_v30 = vld [vmem:[%s1770_s4 + $0x10] sm:$0xff]  ;;  %v775_v43 = vadd.s32 4294967272, %v756_v38  ;;  %v759_v46 = vsub.s32 %v756_v38, %v1597_v21 }
 0x194   : > { %v693_v57 = vmax.f32 %v590_v53, 0.0  ;;  %v593_v58 = vpop.f32.mrb[4].mxu0  ;;  %v730_v59 = vadd.f32 %v719_v51, %v718_v47  ;;  %v747_v29 = vsel %vm731_vm10, %v729_v25, 0.0  ;;  %v1158_v37 = vpack.c.bf16 %v788_v36, %v787_v30 }
 0x195   : > { %v721_v60 = vmul.f32 %v706_v35, %v692_v54  ;;  %v594_v63 = vadd.f32 %v593_v58, %v489_v33  ;;  %v595_v0 = vpop.f32.mrb[5].mxu0  ;;  %v742_v24 = vsel %vm731_vm10, %v726_v12, 0.0  ;;  %v778_v49 = vsub.s32 %v775_v43, %v1597_v21 }
 0x196   : > { %v722_v1 = vmul.f32 %v710_v40, %v693_v57  ;;  %v596_v2 = vadd.f32 %v595_v0, %v489_v33  ;;  %v733_v3 = vadd.f32 %v732_v55, %v730_v59  ;;  %v786_v33 = vld [vmem:[%s1770_s4 + $0x8] sm:$0xff] }
 0x197   : > { %v695_v4 = vmax.f32 %v594_v63, 0.0  ;;  %v1155_v34 = vpack.c.bf16 %v786_v33, %v785_v32 }
 0x198   : > { %v696_v6 = vmax.f32 %v596_v2, 0.0  ;;  %v599_v9 = vpop.f32.mrb[6].mxu0  ;;  %734 = vadd.xlane.f32.xlu0 %v733_v3  ;;  %v736_v10 = vadd.f32 %v722_v1, %v721_v60 }
 0x199   : > { %v724_v13 = vmul.f32 %v706_v35, %v695_v4  ;;  %v600_v14 = vadd.f32 %v599_v9, %v494_v52  ;;  %v601_v15 = vpop.f32.mrb[7].mxu0 }
 0x19a   : > { %v725_v16 = vmul.f32 %v710_v40, %v696_v6  ;;  %v602_v17 = vadd.f32 %v601_v15, %v494_v52  ;;  %v738_v18 = vadd.f32 %v737_v5, %v736_v10 }
 0x19b   : > { %v698_v19 = vmax.f32 %v600_v14, 0.0 }
 0x19c   : > { %v699_v22 = vmax.f32 %v602_v17, 0.0  ;;  %739 = vadd.xlane.f32.xlu1 %v738_v18  ;;  %v741_v7 = vadd.f32 %v725_v16, %v724_v13 }
 0x19d   : > { %v727_v23 = vmul.f32 %v706_v35, %v698_v19  ;;  %v1400_v35 = vmov 0.0|0.0  }
 0x19e   : > { %v728_v26 = vmul.f32 %v710_v40, %v699_v22  ;;  %v743_v27 = vadd.f32 %v742_v24, %v741_v7  ;;  %1154 = vmatprep.subr.bf16.mxu1 %v1400_v35  ;;  %v768_v40 = vadd.s32 4294967280, %v756_v38 }
 0x19f   : > { %1156 = vmatpush3.bf16.msra.mxu1 %v1155_v34 }
 0x1a0   : > { %744 = vadd.xlane.f32.xlu0 %v743_v27  ;;  %v746_v28 = vadd.f32 %v728_v26, %v727_v23  ;;  %1157 = vmatprep.subr.bf16.mxu1 %v1400_v35  ;;  %v771_v45 = vsub.s32 %v768_v40, %v1597_v21  ;;  %v789_v21 = vld [vmem:[%s1771_s5] sm:$0x1] }
 0x1a2   : > { %v748_v31 = vadd.f32 %v747_v29, %v746_v28 }
 0x1a3   : > { %1159 = vmatpush3.bf16.msra.mxu1 %v1158_v37 }
 0x1a4   : > { %749 = vadd.xlane.f32.xlu0 %v748_v31 }
 0x225   : > { %v735_v41 = vpop.xlane.xlu0 %734 }
 0x226   : > { %v760_v8 = vrot.slane %v735_v41, %v759_v46 }
 0x229   : > { %v740_v44 = vpop.xlane.xlu1 %739 }
 0x22a   : > { %v765_v48 = vrot.slane %v740_v44, %v764_v42 }
 0x22c   : > { %v767_v51 = vsel %vm766_vm12, %v765_v48, %v760_v8 }
 0x22d   : > { %v745_v47 = vpop.xlane.xlu0 %744 }
 0x22e   : > { %v772_v50 = vrot.slane %v745_v47, %v771_v45 }
 0x230   : > { %v774_v53 = vsel %vm773_vm13, %v772_v50, %v767_v51 }
 0x231   : > { %v750_v20 = vpop.xlane.xlu0 %749 }
 0x232   : > { %v779_v52 = vrot.slane %v750_v20, %v778_v49 }
 0x234   : > { %v781_v54 = vsel %vm780_vm14, %v779_v52, %v774_v53 }
 0x235   : > { %1136 = vmatmul.mubr.msk.f32.vlgmr.msra.gmra.mrb[4].mxu1 %vm731_vm10, %v781_v54  ;;  %784 = vst.msk [vmem:[%s1777_s17] sm:$0x1] %vm783_vm15, %v781_v54  ;;  %s1661_s17 = scalar_lea.hbm %s1772_s6, %s1647_s26 }
 0x308   : > { %v858_v55 = vpop.f32.mrb[4].mxu1 }
 0x309   : > { %v859_v56 = vadd.f32 %v858_v55, %v789_v21  ;;  %v1137_v57 = vpop.f32.mrb[5].mxu1 }
 0x30b   : > { %v864_v58 = vsel %vm862_vm0, %v859_v56, -inf  ;;  %863 = vst.msk [vmem:[%s334_s24] sm:$0x1] %vm862_vm0, %v859_v56  ;;  %s1270_s24 = sshll.u32 %s1402_s27, 4  ;;  %s1271_s24 = int_to_ptr.vmem [resolvable:$false] %s1270_s24 }
 0x30c   : > { %865 = vmax.xlane.f32.xlu1 %v864_v58  ;;  %s1272_s28 = scalar_lea.vmem %s1271_s24, 32  ;;  %p1273_p0 = scmp.lt.s32.totalorder %s1655_s22, %s1271_s24 }
 0x30d   : > { %p1274_p1 = scmp.lt.s32.totalorder %s1272_s28, %s1266_s0 }
 0x30f   : > { %p1275_p2 = por %p1274_p1, %p1273_p0 }
 0x311   : > { %p1276_p3 = pnand %p1275_p2, %p1269_p13 }
 0x399   : > { %v866_v59 = vpop.xlane.xlu1 %865 }
 0x39a   : > { %v867_v60 = vsub.f32 %v859_v56, %v866_v59  ;;  %vm876_vm1 = vcmp.eq.f32.partialorder %v859_v56, %v866_v59 }
 0x39b   : > { %v877_v61 = vsel %vm876_vm1, %v756_v38, 10 }
 0x39c   : > { %v868_v62 = vmul.f32 1.442695, %v867_v60  ;;  %v878_v63 = vsel %vm862_vm0, %v877_v61, 2147483647 }
 0x39d   : > { %v880_v0 = vshra.s32 %v878_v63, 16  ;;  %v879_v4 = vand.u32 65535, %v878_v63 }
 0x39e   : > { %1262 = vpow2.f32 %v868_v62 }
 0x39f   : > { %v882_v1 = vcvt.s32.f32 %v880_v0  ;;  %v881_v6 = vcvt.s32.f32 %v879_v4 }
 0x3a1   : > { %883 = vmin.xlane.f32.xlu0 %v882_v1 }
 0x3a8   : > { %v1263_v2 = vpop.eup %1262 }
 0x3a9   : > { %v870_v3 = vsel %vm862_vm0, %v1263_v2, 0.0 }
 0x3aa   : > { %871 = vadd.xlane.f32.xlu1 %v870_v3 }
 0x42e   : > { %v1642_v5 = vpop.xlane.xlu0 %883 }
 0x42f   : > { %vm885_vm2 = vcmp.eq.f32.partialorder %v882_v1, %v1642_v5 }
 0x430   : > { %v886_v9 = vsel %vm885_vm2, %v881_v6, inf }
 0x431   : > { %887 = vmin.xlane.f32.xlu0 %v886_v9 }
 0x437   : > { %v872_v10 = vpop.xlane.xlu1 %871 }
 0x438   : > { %1264 = vrcp.f32 %v872_v10 }
 0x442   : > { %v1265_v11 = vpop.eup %1264 }
 0x443   : > { %v874_v12 = vmul.f32 %v1265_v11, %v1263_v2 }
 0x444   : > { %1279 = shalt.err (!%p1276_p3)
}
 0x445   : > { %s1280_s14 = scalar_lea.hbm %s1653_s29, 16  ;;  %s1284_s27 = scalar_lea.hbm %s1773_s7, 32 }
 0x446   : > { %p1281_p4 = scmp.ne.s32.totalorder %s1653_s29, %s1280_s14  ;;  %p1285_p9 = scmp.lt.u32.totalorder %s1653_s29, %s1773_s7 }
 0x447   : > { %p1286_p10 = scmp.lt.u32.totalorder %s1284_s27, %s1280_s14  ;;  %p1288_p12 = scmp.lt.u32.totalorder %s1280_s14, %s1653_s29 }
 0x448   : > { %p1282_p7 = pnand %p1281_p4, %p1495_p5 }
 0x449   : > { %p1287_p11 = por %p1286_p10, %p1285_p9 }
 0x44a   : > { %p1283_p8 = pneg %p1282_p7 }
 0x44b   : > { %p1289_p13 = por %p1288_p12, %p1287_p11 }
 0x44d   : > { %p1290_p0 = pnand %p1289_p13, %p1283_p8 }
 0x44f   : > { %1293 = shalt.err (!%p1290_p0)
}
 0x450   : > { %1162 = dma.vmem_to_hbm [thread:$0]  (%p1495_p5), %s1655_s22, 16, %s1653_s29, %s1663_s13  }
 0x451   : > { %s1786_s0 = scalar_lea.vmem [#allocation2], %s1628_s16  ;;  %s340_s28 = scalar_lea.vmem [#allocation6], %s1628_s16 }
 0x452   : > { %s919_s1 = sshll.u32 %s1786_s0, 4  ;;  %875 = vst.msk [vmem:[%s340_s28] sm:$0x1] %vm862_vm0, %v874_v12  ;;  %s1695_s23 = scalar_lea.hbm %s1774_s8, %s1647_s26  ;;  %s1697_s1 = int_to_ptr.vmem [resolvable:$true] %s919_s1 }
 0x453   : > { %s1699_s27 = sshll.u32 %s340_s28, 4  ;;  %s896_s24 = scalar_lea.sflag [#allocation3], %s1628_s16  ;;  %s946_s27 = int_to_ptr.vmem [resolvable:$true] %s1699_s27 }
 0x454   : > { %s1294_s2 = scalar_lea.vmem %s1697_s1, 16  ;;  %s1403_s29 = smov [#allocation2]  }
 0x455   : > { %p1295_p1 = scmp.ne.s32.totalorder %s1697_s1, %s1294_s2  ;;  %s1298_s22 = sshll.u32 %s1403_s29, 4  ;;  %s1299_s22 = int_to_ptr.vmem [resolvable:$false] %s1298_s22 }
 0x456   : > { %s1300_s0 = scalar_lea.vmem %s1299_s22, 32  ;;  %p1301_p4 = scmp.lt.s32.totalorder %s1697_s1, %s1299_s22 }
 0x457   : > { %p1296_p2 = pnand %p1295_p1, %p1495_p5  ;;  %p1302_p7 = scmp.lt.s32.totalorder %s1300_s0, %s1294_s2 }
 0x459   : > { %p1297_p3 = pneg %p1296_p2  ;;  %p1303_p8 = por %p1302_p7, %p1301_p4 }
 0x45b   : > { %p1304_p9 = pnand %p1303_p8, %p1297_p3 }
 0x45d   : > { %1307 = shalt.err (!%p1304_p9)
}
 0x45e   : > { %s1308_s16 = scalar_lea.hbm %s1661_s17, 16  ;;  %s1312_s14 = scalar_lea.hbm %s1772_s6, 32 }
 0x45f   : > { %p1309_p10 = scmp.ne.s32.totalorder %s1661_s17, %s1308_s16  ;;  %p1313_p13 = scmp.lt.u32.totalorder %s1661_s17, %s1772_s6 }
 0x460   : > { %p1314_p0 = scmp.lt.u32.totalorder %s1312_s14, %s1308_s16  ;;  %p1316_p2 = scmp.lt.u32.totalorder %s1308_s16, %s1661_s17 }
 0x461   : > { %p1310_p11 = pnand %p1309_p10, %p1495_p5 }
 0x462   : > { %p1315_p1 = por %p1314_p0, %p1313_p13 }
 0x463   : > { %p1311_p12 = pneg %p1310_p11 }
 0x464   : > { %p1317_p3 = por %p1316_p2, %p1315_p1 }
 0x466   : > { %p1318_p4 = pnand %p1317_p3, %p1311_p12 }
 0x468   : > { %1321 = shalt.err (!%p1318_p4)
}
 0x469   : > { %1161 = dma.vmem_to_hbm [thread:$0]  (%p1495_p5), %s1697_s1, 16, %s1661_s17, %s896_s24  }
 0x46a   : > { %s1322_s2 = scalar_lea.vmem %s946_s27, 16  ;;  %s1404_s22 = smov [#allocation6]  }
 0x46b   : > { %p1323_p7 = scmp.ne.s32.totalorder %s946_s27, %s1322_s2  ;;  %s1326_s0 = sshll.u32 %s1404_s22, 4  ;;  %s1327_s0 = int_to_ptr.vmem [resolvable:$false] %s1326_s0 }
 0x46c   : > { %s1328_s16 = scalar_lea.vmem %s1327_s0, 32  ;;  %p1329_p10 = scmp.lt.s32.totalorder %s946_s27, %s1327_s0 }
 0x46d   : > { %p1324_p8 = pnand %p1323_p7, %p1495_p5  ;;  %p1330_p11 = scmp.lt.s32.totalorder %s1328_s16, %s1322_s2 }
 0x46f   : > { %p1325_p9 = pneg %p1324_p8  ;;  %p1331_p12 = por %p1330_p11, %p1329_p10 }
 0x471   : > { %p1332_p13 = pnand %p1331_p12, %p1325_p9 }
 0x473   : > { %1335 = shalt.err (!%p1332_p13)
}
 0x474   : > { %s1336_s17 = scalar_lea.hbm %s1695_s23, 16  ;;  %s1340_s26 = scalar_lea.hbm %s1774_s8, 32 }
 0x475   : > { %p1337_p0 = scmp.ne.s32.totalorder %s1695_s23, %s1336_s17  ;;  %p1341_p3 = scmp.lt.u32.totalorder %s1695_s23, %s1774_s8 }
 0x476   : > { %p1342_p4 = scmp.lt.u32.totalorder %s1340_s26, %s1336_s17  ;;  %p1344_p8 = scmp.lt.u32.totalorder %s1336_s17, %s1695_s23 }
 0x477   : > { %p1338_p1 = pnand %p1337_p0, %p1495_p5 }
 0x478   : > { %p1343_p7 = por %p1342_p4, %p1341_p3 }
 0x479   : > { %p1339_p2 = pneg %p1338_p1 }
 0x47a   : > { %p1345_p9 = por %p1344_p8, %p1343_p7 }
 0x47c   : > { %p1346_p10 = pnand %p1345_p9, %p1339_p2 }
 0x47e   : > { %1349 = shalt.err (!%p1346_p10)
}
 0x47f   : > { %1163 = dma.vmem_to_hbm [thread:$0]  (%p1495_p5), %s946_s27, 16, %s1695_s23, %s1663_s13   ;;  %v890_v13 = vcvt.f32.s32 %v1642_v5  ;;  %vm893_vm3 = vcmask 0  }
 0x480   : > { %s353_s2 = scalar_lea.vmem %s1775_s9, %s1507_s21 }
 0x481   : > { %v891_v15 = vshll.u32 %v890_v13, 16 }
 0x4be   : > { %v888_v14 = vpop.xlane.xlu0 %887 }
 0x4bf   : > { %v889_v16 = vcvt.f32.s32 %v888_v14 }
 0x4c1   : > { %v892_v17 = vadd.s32 %v891_v15, %v889_v16 }
 0x4c3   : > { %894 = vst.msk [vmem:[%s353_s2] sm:$0x1] %vm893_vm3, %v892_v17 }
 0x4c4 PF: > { %p1177_p11 = scmp.ge.s32.totalorder %s1388_s12, 2  ;;  %s960_s19 = sand.u32 1, %s1376_s30  }
 0x4c5   : > { %s961_s13 = scalar_lea.sflag [#allocation3], %s960_s19 }
 0x4c6   : > { %p1168_p5 = pnand %p1177_p11, %p1499_p6 }
 0x4c8   : > { %1367 = dma.done.wait (!%p1168_p5), %s961_s13, 16  }
 0x4c9   : > { %1369 = vsyncadd (!%p1168_p5), %s961_s13, 4294967280  ;;  %s1787_s23 = sadd.s32 4294967294, %s1388_s12  }
 0x4ca   : > { %s968_s27 = sand.u32 1, %s1787_s23  }
 0x4cb   : > { %s969_s22 = scalar_lea.sflag [#allocation5], %s968_s27 }
 0x4cc   : > { %1371 = dma.done.wait (!%p1168_p5), %s969_s22, 32  }
 0x4cd   : > { %1373 = vsyncadd (!%p1168_p5), %s969_s22, 4294967264  ;;  %p23_p12 = scmp.ge.s32.totalorder %s1480_s15, 4   ;;  %s1788_s30 = smov %s1380_s10 }
 0x4ce   : > { %s1789_s10 = smov %s1384_s11  ;;  %s1790_s11 = smov %s1493_s18 }
 0x4cf   : > { %s1791_s12 = smov %s1480_s15  ;;  %25 = sbr.rel (!%p23_p12) target bundleno = 9 (0x9), region = 123 }
 0x4d6   :  { %987 = vsyncpa [#allocation3], 1 }
 0x4d7   :  { %989 = vsyncpa [#allocation3 + $0x1], 1 }
 0x4d8   :  { %990 = vsyncpa [#allocation5], 1 }
 0x4d9   :  { %992 = vsyncpa [#allocation5 + $0x1], 1 }

</bundles_post_ra>
